<compile_context>
chip_gen: v5e
topology: v5e:2x2
jax: 0.10.0
libtpu: 0.0.40
codegen_flags: <defaults>
</compile_context>

<pallas_src>
import jax
import jax.numpy as jnp
from jax.experimental import pallas as pl
from jax.experimental.pallas import tpu as pltpu


def _round_up(a: int, b: int) -> int:
    return (a + b - 1) // b * b


def lora_linear_kernel(x_ref, w_ref, a_ref, b_ref, bias_ref, o_ref):
    # x_ref: (tm, Kp)   w_ref: (Kp, tn)   a_ref: (Kp, r)   b_ref: (r, tn)
    # bias_ref: (1, tn) o_ref: (tm, tn)
    x = x_ref[...]
    # Base linear path: (tm, Kp) @ (Kp, tn) -> f32 accumulate on the MXU.
    acc = jnp.dot(x, w_ref[...], preferred_element_type=jnp.float32)
    # Reassociated LoRA path: two skinny matmuls, alpha already folded into B.
    xa = jnp.dot(x, a_ref[...], preferred_element_type=jnp.float32)      # (tm, r)
    acc += jnp.dot(xa.astype(b_ref.dtype), b_ref[...],
                   preferred_element_type=jnp.float32)                    # (tm, tn)
    o_ref[...] = (acc + bias_ref[...]).astype(o_ref.dtype)


def lora_linear(x, weight, bias, A, B, *, alpha,
                tm=512, tn=256, compute_dtype=jnp.bfloat16):
    """x: (..., K); weight: (N, K) (PyTorch nn.Linear layout); bias: (N,);
    A: (K, r); B: (r, N).  Returns (..., N)."""
    out_dtype = x.dtype
    *lead, K = x.shape
    N, K2 = weight.shape
    assert K2 == K, "weight/in_features mismatch"
    r = A.shape[1]

    x2 = x.reshape(-1, K)
    M = x2.shape[0]

    # Lane-dense padding: K and N up to 128-multiples; M up to a sublane (8)
    # multiple and then to the (clamped) row tile.
    Kp = _round_up(K, 128)
    Np = _round_up(N, 128)
    Mp = _round_up(max(M, 8), 8)
    tm_eff = min(tm, Mp)
    Mp = _round_up(Mp, tm_eff)
    tn_eff = min(tn, Np)
    Np = _round_up(Np, tn_eff)

    xp = jnp.pad(x2, ((0, Mp - M), (0, Kp - K))).astype(compute_dtype)
    # Pre-transpose the weight once in the wrapper: (N, K) -> (Kp, Np).
    wT = jnp.pad(weight.T, ((0, Kp - K), (0, Np - N))).astype(compute_dtype)
    Ap = jnp.pad(A, ((0, Kp - K), (0, 0))).astype(compute_dtype)            # (Kp, r)
    Bs = jnp.pad(alpha * B, ((0, 0), (0, Np - N))).astype(compute_dtype)    # (r, Np)
    bp = jnp.pad(bias, (0, Np - N)).astype(jnp.float32).reshape(1, Np)

    grid = (Mp // tm_eff, Np // tn_eff)

    out = pl.pallas_call(
        lora_linear_kernel,
        out_shape=jax.ShapeDtypeStruct((Mp, Np), out_dtype),
        grid_spec=pltpu.PrefetchScalarGridSpec(
            num_scalar_prefetch=0,
            grid=grid,
            in_specs=[
                pl.BlockSpec((tm_eff, Kp), lambda i, j: (i, 0)),   # x row tile
                pl.BlockSpec((Kp, tn_eff), lambda i, j: (0, j)),   # W^T column tile
                pl.BlockSpec((Kp, r), lambda i, j: (0, 0)),        # LoRA A (grid-invariant)
                pl.BlockSpec((r, tn_eff), lambda i, j: (0, j)),    # alpha*B column tile
                pl.BlockSpec((1, tn_eff), lambda i, j: (0, j)),    # bias tile
            ],
            out_specs=pl.BlockSpec((tm_eff, tn_eff), lambda i, j: (i, j)),
        ),
        compiler_params=pltpu.CompilerParams(
            dimension_semantics=("parallel", "parallel"),
            vmem_limit_bytes=48 * 1024 * 1024,
        ),
    )(xp, wT, Ap, Bs, bp)

    return out[:M, :N].reshape(*lead, N)


if __name__ == "__main__":
    # Small shapes consistent with the module: (batch, seq, in_features).
    batch, seq, in_features, out_features = 2, 8, 32, 64
    rank, alpha = 4, 0.5

    key = jax.random.PRNGKey(0)
    kx, kw, kb, ka, kB = jax.random.split(key, 5)

    x = jax.random.normal(kx, (batch, seq, in_features), dtype=jnp.float32)
    weight = jax.random.normal(kw, (out_features, in_features), dtype=jnp.float32) * 0.1
    bias = jax.random.normal(kb, (out_features,), dtype=jnp.float32) * 0.1
    # LoRALayer init: A ~ N(0,1)/sqrt(rank), B starts at zeros.  Use a nonzero
    # B here so the low-rank path is actually exercised by the check.
    A = jax.random.normal(ka, (in_features, rank), dtype=jnp.float32) / jnp.sqrt(
        jnp.float32(rank))
    B = jax.random.normal(kB, (rank, out_features), dtype=jnp.float32) * 0.1

    y = lora_linear(x, weight, bias, A, B, alpha=alpha)
    y = jax.block_until_ready(y)

    # Pure-JAX f32 reference of the PyTorch forward.
    y_ref = x @ weight.T + bias + alpha * (x @ A @ B)

    assert y.shape == (batch, seq, out_features)
    # bf16 operands with f32 accumulation -> loose-but-safe tolerance.
    assert jnp.allclose(y, y_ref, atol=5e-2, rtol=5e-2), "mismatch vs reference"
    print("KERNEL_OK")
</pallas_src>

<mosaic_0001>
module attributes {stable_mosaic.version = 11 : i64} {
  func.func @lora_linear_kernel(%arg0: i32, %arg1: i32, %arg2: memref<16x128xbf16, #tpu.memory_space<vmem>>, %arg3: memref<128x128xbf16, #tpu.memory_space<vmem>>, %arg4: memref<128x4xbf16, #tpu.memory_space<vmem>>, %arg5: memref<4x128xbf16, #tpu.memory_space<vmem>>, %arg6: memref<1x128xf32, #tpu.memory_space<vmem>>, %arg7: memref<16x128xf32, #tpu.memory_space<vmem>>) attributes {dimension_semantics = [#tpu.dimension_semantics<parallel>, #tpu.dimension_semantics<parallel>], iteration_bounds = array<i64: 1, 1>, scalar_prefetch = 0 : i64, scratch_operands = 0 : i64, tpu.core_type = #tpu.core_type<tc>, window_params = [{transform_indices = @transform_0, window_bounds = array<i64: 16, 128>}, {transform_indices = @transform_1, window_bounds = array<i64: 128, 128>}, {pipeline_mode = #tpu.pipeline_mode<synchronous>, transform_indices = @transform_2, window_bounds = array<i64: 128, 4>}, {transform_indices = @transform_3, window_bounds = array<i64: 4, 128>}, {transform_indices = @transform_4, window_bounds = array<i64: 1, 128>}, {transform_indices = @transform_5, window_bounds = array<i64: 16, 128>}]} {
    %c0 = arith.constant 0 : index
    %c0_0 = arith.constant 0 : index
    %0 = vector.load %arg2[%c0, %c0_0] : memref<16x128xbf16, #tpu.memory_space<vmem>>, vector<16x128xbf16>
    %c0_1 = arith.constant 0 : index
    %c0_2 = arith.constant 0 : index
    %1 = vector.load %arg3[%c0_1, %c0_2] : memref<128x128xbf16, #tpu.memory_space<vmem>>, vector<128x128xbf16>
    %cst = arith.constant dense<0.000000e+00> : vector<16x128xf32>
    %2 = tpu.matmul %0, %1, %cst {dimension_numbers = #tpu.dot_dimension_numbers<[1], [0], [0], [1], [0, 0, 1, 1], [], []>} : vector<16x128xbf16>, vector<128x128xbf16>, vector<16x128xf32> -> vector<16x128xf32>
    %c0_3 = arith.constant 0 : index
    %c0_4 = arith.constant 0 : index
    %3 = vector.load %arg4[%c0_3, %c0_4] : memref<128x4xbf16, #tpu.memory_space<vmem>>, vector<128x4xbf16>
    %cst_5 = arith.constant dense<0.000000e+00> : vector<16x4xf32>
    %4 = tpu.matmul %0, %3, %cst_5 {dimension_numbers = #tpu.dot_dimension_numbers<[1], [0], [0], [1], [0, 0, 1, 1], [], []>} : vector<16x128xbf16>, vector<128x4xbf16>, vector<16x4xf32> -> vector<16x4xf32>
    %5 = arith.truncf %4 : vector<16x4xf32> to vector<16x4xbf16>
    %c0_6 = arith.constant 0 : index
    %c0_7 = arith.constant 0 : index
    %6 = vector.load %arg5[%c0_6, %c0_7] : memref<4x128xbf16, #tpu.memory_space<vmem>>, vector<4x128xbf16>
    %cst_8 = arith.constant dense<0.000000e+00> : vector<16x128xf32>
    %7 = tpu.matmul %5, %6, %cst_8 {dimension_numbers = #tpu.dot_dimension_numbers<[1], [0], [0], [1], [0, 0, 1, 1], [], []>} : vector<16x4xbf16>, vector<4x128xbf16>, vector<16x128xf32> -> vector<16x128xf32>
    %8 = arith.addf %2, %7 : vector<16x128xf32>
    %c0_9 = arith.constant 0 : index
    %c0_10 = arith.constant 0 : index
    %9 = vector.load %arg6[%c0_9, %c0_10] : memref<1x128xf32, #tpu.memory_space<vmem>>, vector<1x128xf32>
    %10 = vector.broadcast %9 : vector<1x128xf32> to vector<16x128xf32>
    %11 = arith.addf %8, %10 : vector<16x128xf32>
    %c0_11 = arith.constant 0 : index
    %c0_12 = arith.constant 0 : index
    %12 = vector.load %arg7[%c0_11, %c0_12] : memref<16x128xf32, #tpu.memory_space<vmem>>, vector<16x128xf32>
    tpu.vector_store %arg7[%c0_11, %c0_12], %11 {strides = array<i32>} : memref<16x128xf32, #tpu.memory_space<vmem>>, vector<16x128xf32>,
    return
  }
  func.func @transform_0(%arg0: i32, %arg1: i32) -> (i32, i32) {
    %c0_i32 = arith.constant 0 : i32
    %c0_i32_0 = arith.constant 0 : i32
    return %arg0, %c0_i32 : i32, i32
  }
  func.func @transform_1(%arg0: i32, %arg1: i32) -> (i32, i32) {
    %c0_i32 = arith.constant 0 : i32
    %c0_i32_0 = arith.constant 0 : i32
    return %c0_i32, %arg1 : i32, i32
  }
  func.func @transform_2(%arg0: i32, %arg1: i32) -> (i32, i32) {
    %c0_i32 = arith.constant 0 : i32
    %c0_i32_0 = arith.constant 0 : i32
    %c0_i32_1 = arith.constant 0 : i32
    return %c0_i32, %c0_i32_0 : i32, i32
  }
  func.func @transform_3(%arg0: i32, %arg1: i32) -> (i32, i32) {
    %c0_i32 = arith.constant 0 : i32
    %c0_i32_0 = arith.constant 0 : i32
    return %c0_i32, %arg1 : i32, i32
  }
  func.func @transform_4(%arg0: i32, %arg1: i32) -> (i32, i32) {
    %c0_i32 = arith.constant 0 : i32
    %c0_i32_0 = arith.constant 0 : i32
    return %c0_i32, %arg1 : i32, i32
  }
  func.func @transform_5(%arg0: i32, %arg1: i32) -> (i32, i32) {
    %c0_i32 = arith.constant 0 : i32
    return %arg0, %arg1 : i32, i32
  }
}

</mosaic_0001>

<bundles_post_ra>
// kernel: tpu_custom_call.1
= control target key start
LH: loop header
LB: loop body
LE: loop exit
PB: predicated region body
PF: predicated region fallthrough
CT: control target
= control target key end

     0   :  { %10 = vsyncpa [#allocation3], 0  ;;  %s494_s0 = inlined_call_operand.hbm [shape: bf16[16,128], index: 0, kind: input, shape index: {}]   ;;  %s495_s1 = inlined_call_operand.vmem [shape: bf16[128,128], index: 1, kind: input, shape index: {}]   ;;  %s496_s2 = inlined_call_operand.vmem [shape: bf16[128,4], index: 2, kind: input, shape index: {}]   ;;  %s497_s3 = inlined_call_operand.vmem [shape: bf16[4,128], index: 3, kind: input, shape index: {}]   ;;  %s498_s4 = inlined_call_operand.vmem [shape: f32[1,128], index: 4, kind: input, shape index: {}]   ;;  %s499_s5 = inlined_call_operand.hbm [shape: f32[16,128], index: 5, kind: output, shape index: {}]  }
   0x1   :  { %11 = vsyncpa [#allocation4], 0  ;;  %s16_s20 = sshll.u32 %s494_s0, 4  ;;  %s398_s21 = smov [#allocation2]   ;;  %s17_s20 = int_to_ptr.hbm [resolvable:$true] %s16_s20 }
   0x2   :  { %s18_s22 = sshll.u32 %s398_s21, 4  ;;  %s399_s23 = smov 64   ;;  %s19_s22 = int_to_ptr.vmem [resolvable:$true] %s18_s22 }
   0x3   :  { %s400_s24 = smov 4  }
   0x4   :  { %24 = dma.hbm_to_vmem [thread:$0]  %s17_s20, 128, %s19_s22, [#allocation3], %s399_s23, %s399_s23, %s400_s24  }
   0x5   :  { %394 = dma.done.wait [#allocation3], 128  }
   0x6   :  { %395 = vsyncadd [#allocation3], 4294967168  ;;  %v338_v0 = vld [vmem:[%s496_s2 + $0x38] sm:$0xff]  ;;  %v337_v1 = vld [vmem:[%s496_s2 + $0x30] sm:$0xff]  ;;  %vm146_vm0 = vcmask 1041408   ;;  %vm142_vm1 = vcmask 31744  }
   0x7   :  { %126 = vmatpush.bf16.msra.mxu0 %v338_v0  ;;  %v330_v2 = vld [vmem:[%s495_s1 + $0x38] sm:$0xff]  ;;  %v329_v3 = vld [vmem:[%s495_s1 + $0x30] sm:$0xff]  ;;  %v336_v4 = vld [vmem:[%s496_s2 + $0x28] sm:$0xff]  ;;  %s240_s10 = sshll.u32 %s499_s5, 4  ;;  %s402_s11 = smov 128   ;;  %s241_s10 = int_to_ptr.hbm [resolvable:$true] %s240_s10 }
   0x8   :  { %212 = vmatpush.bf16.msra.mxu2 %v330_v2  ;;  %v328_v5 = vld [vmem:[%s495_s1 + $0x28] sm:$0xff]  ;;  %v335_v6 = vld [vmem:[%s496_s2 + $0x20] sm:$0xff]  ;;  %v334_v8 = vld [vmem:[%s496_s2 + $0x18] sm:$0xff]  ;;  %s403_s12 = smov 8  }
   0x9   :  { %v327_v7 = vld [vmem:[%s495_s1 + $0x20] sm:$0xff]  ;;  %v326_v9 = vld [vmem:[%s495_s1 + $0x18] sm:$0xff]  ;;  %v333_v10 = vld [vmem:[%s496_s2 + $0x10] sm:$0xff] }
   0xa   :  { %v325_v11 = vld [vmem:[%s495_s1 + $0x10] sm:$0xff]  ;;  %v332_v12 = vld [vmem:[%s496_s2 + $0x8] sm:$0xff]  ;;  %v331_v14 = vld [vmem:[%s496_s2] sm:$0xff] }
   0xb   :  { %127 = vmatpush.bf16.msra.mxu0 %v337_v1  ;;  %v324_v13 = vld [vmem:[%s495_s1 + $0x8] sm:$0xff]  ;;  %v322_v15 = vld [vmem:[#allocation2] sm:$0xff] }
   0xc   :  { %213 = vmatpush.bf16.msra.mxu2 %v329_v3  ;;  %v323_v16 = vld [vmem:[%s495_s1] sm:$0xff]  ;;  %s401_s1 = smov [#allocation5]  }
   0xd   :  { %v141_v17 = vld [vmem:[%s497_s3] sm:$0x3]  ;;  %s238_s8 = sshll.u32 %s401_s1, 4  ;;  %s239_s8 = int_to_ptr.vmem [resolvable:$true] %s238_s8 }
   0xe   :  { %v148_v18 = vsel %vm146_vm0, %v141_v17, 0  ;;  %v345_v23 = vld [vmem:[%s498_s4] ss:$0 sm:$0xff] }
   0xf   :  { %128 = vmatpush.bf16.msra.mxu0 %v336_v4  ;;  %157 = vmatpush.bf16.msra.mxu1 %v148_v18 }
  0x10   :  { %214 = vmatpush.bf16.msra.mxu2 %v328_v5 }
  0x13   :  { %129 = vmatpush.bf16.msra.mxu0 %v335_v6 }
  0x14   :  { %215 = vmatpush.bf16.msra.mxu2 %v327_v7 }
  0x17   :  { %130 = vmatpush.bf16.msra.mxu0 %v334_v8 }
  0x18   :  { %216 = vmatpush.bf16.msra.mxu2 %v326_v9 }
  0x1b   :  { %131 = vmatpush.bf16.msra.mxu0 %v333_v10 }
  0x1c   :  { %217 = vmatpush.bf16.msra.mxu2 %v325_v11 }
  0x1f   :  { %132 = vmatpush.bf16.msra.mxu0 %v332_v12 }
  0x20   :  { %218 = vmatpush.bf16.msra.mxu2 %v324_v13 }
  0x23   :  { %133 = vmatpush.bf16.msra.mxu0 %v331_v14 }
  0x24   :  { %219 = vmatpush.bf16.msra.mxu2 %v323_v16 }
  0x26   :  { %134 = vmatmul.bf16.vlgmr.msra.gmra.mxu0 %v322_v15 }
  0x27   :  { %220 = vmatmul.bf16.vlgmr.msra.gmra.mxu2 %v322_v15 }
  0xa3   :  { %v135_v19 = vpop.f32.mrf.mxu0 }
  0xaa   :  { %v221_v22 = vpop.f32.mrf.mxu2 }
  0xab   :  { %v137_v20 = vpop.f32.mrf.mxu0 }
  0xac   :  { %v140_v21 = vpack.c.bf16 %v137_v20, %v135_v19 }
  0xae   :  { %289 = vmatmul.msk.bf16.vlgmr.msra.gmra.mxu1 %vm142_vm1, %v140_v21 }
  0xb2   :  { %v223_v27 = vpop.f32.mrf.mxu2 }
 0x12b   :  { %v159_v24 = vpop.f32.mrf.mxu1 }
 0x12c   :  { %v222_v25 = vadd.f32 %v221_v22, %v159_v24 }
 0x12e   :  { %v230_v26 = vadd.f32 %v345_v23, %v222_v25 }
 0x130   :  { %232 = vst [vmem:[#allocation5] sm:$0xff] %v230_v26 }
 0x133   :  { %v161_v28 = vpop.f32.mrf.mxu1 }
 0x134   :  { %v224_v29 = vadd.f32 %v223_v27, %v161_v28 }
 0x136   :  { %v231_v30 = vadd.f32 %v345_v23, %v224_v29 }
 0x138   :  { %233 = vst [vmem:[#allocation5 + $0x8] sm:$0xff] %v231_v30 }
 0x139   :  { %246 = dma.vmem_to_hbm [thread:$0]  %s239_s8, 256, %s241_s10, [#allocation4], %s402_s11, %s402_s11, %s403_s12  }
 0x13a   :  { %396 = dma.done.wait [#allocation4], 256  }
 0x13b   :  { %397 = vsyncadd [#allocation4], 4294967040 }
 0x13c   :  { %251 = vsyncpa [#allocation3], 1 }
 0x13d   :  { %252 = vsyncpa [#allocation4], 1 }

</bundles_post_ra>
